<compile_context>
chip_gen: v5e
topology: v5e:2x2
jax: 0.10.0
libtpu: 0.0.40
codegen_flags: <defaults>
</compile_context>

<pallas_src>
import jax
import jax.numpy as jnp
import numpy as np
from jax.experimental import pallas as pl
from jax.experimental.pallas import tpu as pltpu

BN_EPS = 1e-5


def _ru(x, m):
    return ((x + m - 1) // m) * m


def init_params(key, cfg):
    """Raw parameters in the same layout as the PyTorch module."""
    H, D = cfg['lstm_hidden_dim'], cfg['size_eeg_stat']
    n_pers, cat = cfg['size_personality'], cfg['cat_personality']
    fusion = H + cfg['size_eda'] + cfg['size_bvp'] + n_pers * cat

    def u(k, shape, scale=0.1):
        return scale * jax.random.uniform(k, shape, jnp.float32, -1.0, 1.0)

    keys = iter(jax.random.split(key, 64))
    p = {}
    for l in range(cfg['lstm_num_layers']):
        in_l = D if l == 0 else H
        p[f'w_ih_{l}'] = u(next(keys), (4 * H, in_l))
        p[f'w_hh_{l}'] = u(next(keys), (4 * H, H))  # no effect: h0 == 0, seq_len == 1
        p[f'b_ih_{l}'] = u(next(keys), (4 * H,))
        p[f'b_hh_{l}'] = u(next(keys), (4 * H,))
    p['emb_table'] = u(next(keys), (n_pers, cat), 1.0)
    p['w1'] = u(next(keys), (256, fusion))
    p['b1'] = u(next(keys), (256,))
    p['gamma'] = 1.0 + u(next(keys), (256,))
    p['beta'] = u(next(keys), (256,))
    p['w2'] = u(next(keys), (128, 256))
    p['b2'] = u(next(keys), (128,))
    p['w3'] = u(next(keys), (cfg['clf_out'], 128))
    p['b3'] = u(next(keys), (cfg['clf_out'],))
    return p


def _static_dims(cfg):
    H = cfg['lstm_hidden_dim']
    D = cfg['size_eeg_stat']
    L = cfg['lstm_num_layers']
    rest = cfg['size_eda'] + cfg['size_bvp'] + cfg['size_personality'] * cfg['cat_personality']
    KP = _ru(max(D, 4 * H), 128)               # padded LSTM-side width (lane aligned)
    RP = _ru(rest, 128)                        # padded eda|bvp|pers width
    G = _ru(4 * H, 128)                        # per-layer stride inside the bias slab
    WC = max(128, _ru(cfg['clf_out'], 128))    # padded width of the classifier tail
    return H, D, L, rest, KP, RP, G, WC


def prepare_params(params, cfg):
    """One-time packing of all constants (hoisted out of the per-call path)."""
    H, D, L, rest, KP, RP, G, WC = _static_dims(cfg)
    clf_out = cfg['clf_out']
    f32, bf16 = jnp.float32, jnp.bfloat16

    # Gate column layout [ i | g | o | g ] (PyTorch order is [i, f, g, o]):
    # the forget gate multiplies c0 == 0 so it is dropped; its slot duplicates g so
    # the in-kernel lane rotation is insensitive to the rotate-direction convention.
    perm = np.concatenate([np.arange(0, H), np.arange(2 * H, 3 * H),
                           np.arange(3 * H, 4 * H), np.arange(2 * H, 3 * H)])

    w_stack, b_parts = [], []
    for l in range(L):
        in_l = D if l == 0 else H
        wt = params[f'w_ih_{l}'][perm, :].T                       # (in_l, 4H)
        w_stack.append(jnp.zeros((KP, 4 * H), f32).at[:in_l].set(wt))
        b = (params[f'b_ih_{l}'] + params[f'b_hh_{l}'])[perm]     # pre-summed biases
        b_parts.append(jnp.zeros((G,), f32).at[:4 * H].set(b))
    w_lstm = jnp.stack(w_stack).astype(bf16)                      # (L, KP, 4H) bf16

    # Linear(fusion_dim, 256): the concat is folded into ONE packed (KP+RP, 256)
    # weight slab; zero rows kill the padded / garbage lanes of the fused LHS.
    w1t = params['w1'].T                                          # (H+rest, 256)
    w1h = jnp.zeros((KP, 256), f32).at[:H].set(w1t[:H])
    w1r = jnp.zeros((RP, 256), f32).at[:rest].set(w1t[H:])
    w1 = jnp.concatenate([w1h, w1r], axis=0).astype(bf16)         # (KP+RP, 256) bf16

    # Linear(256,128) and Linear(128,clf_out) packed along rows; clf_out padded to a
    # full 128-lane width for an unmasked lane-dense output store.
    w2p = jnp.zeros((256, WC), f32).at[:, :128].set(params['w2'].T)
    w3p = jnp.zeros((WC, WC), f32).at[:128, :clf_out].set(params['w3'].T)
    w23 = jnp.concatenate([w2p, w3p], axis=0).astype(bf16)        # (256+WC, WC) bf16

    # Single (1, N) f32 bias/scale slab: [lstm biases | b1 | gamma | beta | b2 | b3].
    b2p = jnp.zeros((WC,), f32).at[:128].set(params['b2'])
    b3p = jnp.zeros((WC,), f32).at[:clf_out].set(params['b3'])
    bias = jnp.concatenate(
        b_parts + [params['b1'], params['gamma'], params['beta'], b2p, b3p])[None, :]

    return {'emb_table': params['emb_table'], 'w_lstm': w_lstm,
            'w1': w1, 'w23': w23, 'bias': bias}


def make_kernel(cfg):
    H, D, L, rest, KP, RP, G, WC = _static_dims(cfg)
    FH = 4 * H
    OB1 = L * G            # b1
    OG = OB1 + 256         # gamma
    OBT = OG + 256         # beta
    OB2 = OBT + 256        # b2
    OB3 = OB2 + WC         # b3
    bf16 = jnp.bfloat16

    def kernel(act_ref, wl_ref, w1_ref, w23_ref, b_ref, out_ref, fused_ref):
        # fused_ref: (B, KP+RP) bf16 LHS of the single fused Linear1 matmul.
        #   lanes [0:KP)  <- final LSTM hidden h (garbage lanes killed by zero w1 rows)
        #   lanes [KP: )  <- eda | bvp | personality-embedding (copied once from act)
        fused_ref[:, KP:] = act_ref[:, KP:].astype(bf16)
        if KP > FH:
            # pre-zero once so pad lanes [FH:KP) never hold uninitialized VMEM
            fused_ref[:, :KP] = jnp.zeros((fused_ref.shape[0], KP), bf16)

        # ---- LSTM: one time step per layer, h0 = c0 = 0 ----
        # W_hh @ h0 == 0 and the forget gate multiplies c0 == 0, so both drop out.
        # Gate lane layout: [ i | g | o | g ].
        x = act_ref[:, :KP].astype(bf16)
        for l in range(L):
            gates = (jnp.dot(x, wl_ref[l], preferred_element_type=jnp.float32)
                     + b_ref[:, l * G:l * G + FH])
            s = jax.nn.sigmoid(gates)                    # full-vreg EUP op
            t = jnp.tanh(gates)                          # full-vreg EUP op
            t_g = pltpu.roll(t, shift=3 * H, axis=1)     # tanh(g)    -> lanes [0:H)
            s_o = pltpu.roll(s, shift=2 * H, axis=1)     # sigmoid(o) -> lanes [0:H)
            h = (s_o * jnp.tanh(s * t_g)).astype(bf16)   # lanes [0:H) valid, rest finite junk
            if l + 1 < L:
                if KP == FH:
                    x = h                                # stays in vregs
                else:
                    fused_ref[:, :FH] = h                # pad lanes [FH:KP) already zero
                    x = fused_ref[:, :KP]
            else:
                fused_ref[:, :FH] = h                    # h -> first block of fused LHS

        # ---- Linear(fusion_dim, 256): ONE fused (B, KP+RP) @ (KP+RP, 256) matmul ----
        y = (jnp.dot(fused_ref[...], w1_ref[...], preferred_element_type=jnp.float32)
             + b_ref[:, OB1:OB1 + 256])
        y = jnp.maximum(y, 0.0)

        # ---- BatchNorm1d(256): training-mode batch stats, folded scale/shift ----
        mean = jnp.mean(y, axis=0, keepdims=True)
        var = jnp.maximum(jnp.mean(y * y, axis=0, keepdims=True) - mean * mean, 0.0)
        scale = b_ref[:, OG:OG + 256] * jax.lax.rsqrt(var + BN_EPS)
        shift = b_ref[:, OBT:OBT + 256] - mean * scale
        y = y * scale + shift

        # ---- Linear(256,128) -> ReLU -> Linear(128,clf_out) -> Sigmoid ----
        y = jnp.maximum(
            jnp.dot(y.astype(bf16), w23_ref[:256, :], preferred_element_type=jnp.float32)
            + b_ref[:, OB2:OB2 + WC], 0.0)
        y = (jnp.dot(y.astype(bf16), w23_ref[256:, :], preferred_element_type=jnp.float32)
             + b_ref[:, OB3:OB3 + WC])
        out_ref[...] = jax.nn.sigmoid(y)                 # lane-dense (B, WC) store

    return kernel


def make_forward(cfg):
    H, D, L, rest, KP, RP, G, WC = _static_dims(cfg)
    n_pers, cat = cfg['size_personality'], cfg['cat_personality']
    clf_out = cfg['clf_out']
    kernel = make_kernel(cfg)
    vmem = pl.BlockSpec(memory_space=pltpu.MemorySpace.VMEM)

    @jax.jit
    def forward(prep, eeg, eda, bvp, personality):
        B = eeg.shape[0]
        f32 = jnp.float32
        # Personality embedding as a plain gather (no one-hot matmul in the kernel).
        pers = jnp.take(prep['emb_table'], personality, axis=0).reshape(B, n_pers * cat)
        # One packed, lane-aligned activation slab: [eeg|pad | eda,bvp,pers|pad].
        parts = [eeg.astype(f32)]
        if KP > D:
            parts.append(jnp.zeros((B, KP - D), f32))
        parts += [eda.astype(f32), bvp.astype(f32), pers.astype(f32)]
        if RP > rest:
            parts.append(jnp.zeros((B, RP - rest), f32))
        act = jnp.concatenate(parts, axis=1)              # (B, KP + RP)

        # Gridless single invocation: BatchNorm needs batch-global statistics, so the
        # batch must not be split across grid blocks / TensorCores.  Larger batches
        # per call simply grow B here and amortize fixed overhead.
        out = pl.pallas_call(
            kernel,
            out_shape=jax.ShapeDtypeStruct((B, WC), jnp.float32),
            in_specs=[vmem] * 5,
            out_specs=vmem,
            scratch_shapes=[pltpu.VMEM((B, KP + RP), jnp.bfloat16)],
        )(act, prep['w_lstm'], prep['w1'], prep['w23'], prep['bias'])
        return out[:, :clf_out]

    return forward


def reference_forward(params, eeg, eda, bvp, personality, cfg):
    """Pure-JAX (f32) mirror of the PyTorch forward (for verification)."""
    H = cfg['lstm_hidden_dim']
    h = eeg
    for l in range(cfg['lstm_num_layers']):
        gates = h @ params[f'w_ih_{l}'].T + params[f'b_ih_{l}'] + params[f'b_hh_{l}']
        i_g = jax.nn.sigmoid(gates[:, :H])
        g_g = jnp.tanh(gates[:, 2 * H:3 * H])
        o_g = jax.nn.sigmoid(gates[:, 3 * H:])
        h = o_g * jnp.tanh(i_g * g_g)
    pers = params['emb_table'][personality].reshape(personality.shape[0], -1)
    x = jnp.concatenate([h, eda, bvp, pers], axis=1)
    x = jnp.maximum(x @ params['w1'].T + params['b1'], 0.0)
    mean = jnp.mean(x, axis=0, keepdims=True)
    var = jnp.mean((x - mean) ** 2, axis=0, keepdims=True)
    x = (x - mean) / jnp.sqrt(var + BN_EPS) * params['gamma'] + params['beta']
    x = jnp.maximum(x @ params['w2'].T + params['b2'], 0.0)
    return jax.nn.sigmoid(x @ params['w3'].T + params['b3'])


if __name__ == "__main__":
    cfg = dict(size_eeg_stat=32, lstm_hidden_dim=32, lstm_num_layers=2,
               size_personality=5, cat_personality=4,
               size_eda=8, size_bvp=8, clf_out=3)
    B = 8

    key = jax.random.PRNGKey(0)
    kp, ke, ka, kb, kpr = jax.random.split(key, 5)
    params = init_params(kp, cfg)
    prep = prepare_params(params, cfg)      # constant packing: done exactly once

    eeg = jax.random.normal(ke, (B, cfg['size_eeg_stat']), jnp.float32)
    eda = jax.random.normal(ka, (B, cfg['size_eda']), jnp.float32)
    bvp = jax.random.normal(kb, (B, cfg['size_bvp']), jnp.float32)
    personality = jax.random.randint(kpr, (B, cfg['size_personality']),
                                     0, cfg['size_personality'])

    forward = make_forward(cfg)
    out = jax.block_until_ready(forward(prep, eeg, eda, bvp, personality))

    ref = reference_forward(params, eeg, eda, bvp, personality, cfg)
    # Tolerance loosened vs. f32-only version: weights and matmul LHS are bf16
    # (f32 accumulation), as recommended by the performance review.
    np.testing.assert_allclose(np.asarray(out), np.asarray(ref), rtol=3e-2, atol=3e-2)

    print("KERNEL_OK")
</pallas_src>

<mosaic_0001>
module attributes {stable_mosaic.version = 11 : i64} {
  func.func @kernel(%arg0: memref<8x256xf32, #tpu.memory_space<vmem>>, %arg1: memref<2x128x128xbf16, #tpu.memory_space<vmem>>, %arg2: memref<256x256xbf16, #tpu.memory_space<vmem>>, %arg3: memref<384x128xbf16, #tpu.memory_space<vmem>>, %arg4: memref<1x1280xf32, #tpu.memory_space<vmem>>, %arg5: memref<8x128xf32, #tpu.memory_space<vmem>>, %arg6: memref<8x256xbf16, #tpu.memory_space<vmem>>) attributes {dimension_semantics = [], scalar_prefetch = 0 : i64, scratch_operands = 1 : i64, tpu.core_type = #tpu.core_type<tc>} {
    %c0 = arith.constant 0 : index
    %c128 = arith.constant 128 : index
    %0 = vector.load %arg0[%c0, %c128] : memref<8x256xf32, #tpu.memory_space<vmem>>, vector<8x128xf32>
    %1 = arith.truncf %0 : vector<8x128xf32> to vector<8x128xbf16>
    %c0_0 = arith.constant 0 : index
    %c128_1 = arith.constant 128 : index
    %2 = vector.load %arg6[%c0_0, %c128_1] : memref<8x256xbf16, #tpu.memory_space<vmem>>, vector<8x128xbf16>
    tpu.vector_store %arg6[%c0_0, %c128_1], %1 {strides = array<i32>} : memref<8x256xbf16, #tpu.memory_space<vmem>>, vector<8x128xbf16>,
    %c0_2 = arith.constant 0 : index
    %c0_3 = arith.constant 0 : index
    %3 = vector.load %arg0[%c0_2, %c0_3] : memref<8x256xf32, #tpu.memory_space<vmem>>, vector<8x128xf32>
    %4 = arith.truncf %3 : vector<8x128xf32> to vector<8x128xbf16>
    %c0_4 = arith.constant 0 : index
    %c0_5 = arith.constant 0 : index
    %c0_6 = arith.constant 0 : index
    %5 = vector.load %arg1[%c0_4, %c0_5, %c0_6] : memref<2x128x128xbf16, #tpu.memory_space<vmem>>, vector<1x128x128xbf16>
    %6 = vector.shape_cast %5 : vector<1x128x128xbf16> to vector<128x128xbf16>
    %cst = arith.constant dense<0.000000e+00> : vector<8x128xf32>
    %7 = tpu.matmul %4, %6, %cst {dimension_numbers = #tpu.dot_dimension_numbers<[1], [0], [0], [1], [0, 0, 1, 1], [], []>} : vector<8x128xbf16>, vector<128x128xbf16>, vector<8x128xf32> -> vector<8x128xf32>
    %c0_7 = arith.constant 0 : index
    %c0_8 = arith.constant 0 : index
    %8 = vector.load %arg4[%c0_7, %c0_8] : memref<1x1280xf32, #tpu.memory_space<vmem>>, vector<1x128xf32>
    %9 = vector.broadcast %8 : vector<1x128xf32> to vector<8x128xf32>
    %10 = arith.addf %7, %9 : vector<8x128xf32>
    %11 = arith.negf %10 : vector<8x128xf32>
    %12 = math.exp %11 : vector<8x128xf32>
    %cst_9 = arith.constant 1.000000e+00 : f32
    %13 = vector.broadcast %cst_9 : f32 to vector<8x128xf32>
    %14 = arith.addf %13, %12 : vector<8x128xf32>
    %15 = arith.divf %13, %14 : vector<8x128xf32>
    %16 = math.tanh %10 : vector<8x128xf32>
    %c96_i32 = arith.constant 96 : i32
    %17 = tpu.dynamic_rotate %16 by %c96_i32 dim 1 : vector<8x128xf32>, i32 -> vector<8x128xf32>
    %c64_i32 = arith.constant 64 : i32
    %18 = tpu.dynamic_rotate %15 by %c64_i32 dim 1 : vector<8x128xf32>, i32 -> vector<8x128xf32>
    %19 = arith.mulf %15, %17 : vector<8x128xf32>
    %20 = math.tanh %19 : vector<8x128xf32>
    %21 = arith.mulf %18, %20 : vector<8x128xf32>
    %22 = arith.truncf %21 : vector<8x128xf32> to vector<8x128xbf16>
    %c1 = arith.constant 1 : index
    %c0_10 = arith.constant 0 : index
    %c0_11 = arith.constant 0 : index
    %23 = vector.load %arg1[%c1, %c0_10, %c0_11] : memref<2x128x128xbf16, #tpu.memory_space<vmem>>, vector<1x128x128xbf16>
    %24 = vector.shape_cast %23 : vector<1x128x128xbf16> to vector<128x128xbf16>
    %cst_12 = arith.constant dense<0.000000e+00> : vector<8x128xf32>
    %25 = tpu.matmul %22, %24, %cst_12 {dimension_numbers = #tpu.dot_dimension_numbers<[1], [0], [0], [1], [0, 0, 1, 1], [], []>} : vector<8x128xbf16>, vector<128x128xbf16>, vector<8x128xf32> -> vector<8x128xf32>
    %c0_13 = arith.constant 0 : index
    %c128_14 = arith.constant 128 : index
    %26 = vector.load %arg4[%c0_13, %c128_14] : memref<1x1280xf32, #tpu.memory_space<vmem>>, vector<1x128xf32>
    %27 = vector.broadcast %26 : vector<1x128xf32> to vector<8x128xf32>
    %28 = arith.addf %25, %27 : vector<8x128xf32>
    %29 = arith.negf %28 : vector<8x128xf32>
    %30 = math.exp %29 : vector<8x128xf32>
    %cst_15 = arith.constant 1.000000e+00 : f32
    %31 = vector.broadcast %cst_15 : f32 to vector<8x128xf32>
    %32 = arith.addf %31, %30 : vector<8x128xf32>
    %33 = arith.divf %31, %32 : vector<8x128xf32>
    %34 = math.tanh %28 : vector<8x128xf32>
    %c96_i32_16 = arith.constant 96 : i32
    %35 = tpu.dynamic_rotate %34 by %c96_i32_16 dim 1 : vector<8x128xf32>, i32 -> vector<8x128xf32>
    %c64_i32_17 = arith.constant 64 : i32
    %36 = tpu.dynamic_rotate %33 by %c64_i32_17 dim 1 : vector<8x128xf32>, i32 -> vector<8x128xf32>
    %37 = arith.mulf %33, %35 : vector<8x128xf32>
    %38 = math.tanh %37 : vector<8x128xf32>
    %39 = arith.mulf %36, %38 : vector<8x128xf32>
    %40 = arith.truncf %39 : vector<8x128xf32> to vector<8x128xbf16>
    %c0_18 = arith.constant 0 : index
    %c0_19 = arith.constant 0 : index
    %41 = vector.load %arg6[%c0_18, %c0_19] : memref<8x256xbf16, #tpu.memory_space<vmem>>, vector<8x128xbf16>
    tpu.vector_store %arg6[%c0_18, %c0_19], %40 {strides = array<i32>} : memref<8x256xbf16, #tpu.memory_space<vmem>>, vector<8x128xbf16>,
    %c0_20 = arith.constant 0 : index
    %c0_21 = arith.constant 0 : index
    %42 = vector.load %arg6[%c0_20, %c0_21] : memref<8x256xbf16, #tpu.memory_space<vmem>>, vector<8x256xbf16>
    %c0_22 = arith.constant 0 : index
    %c0_23 = arith.constant 0 : index
    %43 = vector.load %arg2[%c0_22, %c0_23] : memref<256x256xbf16, #tpu.memory_space<vmem>>, vector<256x256xbf16>
    %cst_24 = arith.constant dense<0.000000e+00> : vector<8x256xf32>
    %44 = tpu.matmul %42, %43, %cst_24 {dimension_numbers = #tpu.dot_dimension_numbers<[1], [0], [0], [1], [0, 0, 1, 1], [], []>} : vector<8x256xbf16>, vector<256x256xbf16>, vector<8x256xf32> -> vector<8x256xf32>
    %c0_25 = arith.constant 0 : index
    %c256 = arith.constant 256 : index
    %45 = vector.load %arg4[%c0_25, %c256] : memref<1x1280xf32, #tpu.memory_space<vmem>>, vector<1x256xf32>
    %46 = vector.broadcast %45 : vector<1x256xf32> to vector<8x256xf32>
    %47 = arith.addf %44, %46 : vector<8x256xf32>
    %cst_26 = arith.constant 0.000000e+00 : f32
    %48 = vector.broadcast %cst_26 : f32 to vector<8x256xf32>
    %49 = arith.maximumf %47, %48 : vector<8x256xf32>
    %cst_27 = arith.constant dense<0.000000e+00> : vector<256xf32>
    %50 = vector.multi_reduction <add>, %49, %cst_27 [0] : vector<8x256xf32> to vector<256xf32>
    %51 = vector.shape_cast %50 : vector<256xf32> to vector<1x256xf32>
    %cst_28 = arith.constant 8.000000e+00 : f32
    %52 = vector.broadcast %cst_28 : f32 to vector<1x256xf32>
    %53 = arith.divf %51, %52 : vector<1x256xf32>
    %54 = arith.mulf %49, %49 : vector<8x256xf32>
    %cst_29 = arith.constant dense<0.000000e+00> : vector<256xf32>
    %55 = vector.multi_reduction <add>, %54, %cst_29 [0] : vector<8x256xf32> to vector<256xf32>
    %56 = vector.shape_cast %55 : vector<256xf32> to vector<1x256xf32>
    %cst_30 = arith.constant 8.000000e+00 : f32
    %57 = vector.broadcast %cst_30 : f32 to vector<1x256xf32>
    %58 = arith.divf %56, %57 : vector<1x256xf32>
    %59 = arith.mulf %53, %53 : vector<1x256xf32>
    %60 = arith.subf %58, %59 : vector<1x256xf32>
    %cst_31 = arith.constant 0.000000e+00 : f32
    %61 = vector.broadcast %cst_31 : f32 to vector<1x256xf32>
    %62 = arith.maximumf %60, %61 : vector<1x256xf32>
    %c0_32 = arith.constant 0 : index
    %c512 = arith.constant 512 : index
    %63 = vector.load %arg4[%c0_32, %c512] : memref<1x1280xf32, #tpu.memory_space<vmem>>, vector<1x256xf32>
    %cst_33 = arith.constant 9.99999974E-6 : f32
    %64 = vector.broadcast %cst_33 : f32 to vector<1x256xf32>
    %65 = arith.addf %62, %64 : vector<1x256xf32>
    %66 = math.rsqrt %65 : vector<1x256xf32>
    %67 = arith.mulf %63, %66 : vector<1x256xf32>
    %c0_34 = arith.constant 0 : index
    %c768 = arith.constant 768 : index
    %68 = vector.load %arg4[%c0_34, %c768] : memref<1x1280xf32, #tpu.memory_space<vmem>>, vector<1x256xf32>
    %69 = arith.mulf %53, %67 : vector<1x256xf32>
    %70 = arith.subf %68, %69 : vector<1x256xf32>
    %71 = vector.broadcast %67 : vector<1x256xf32> to vector<8x256xf32>
    %72 = arith.mulf %49, %71 : vector<8x256xf32>
    %73 = vector.broadcast %70 : vector<1x256xf32> to vector<8x256xf32>
    %74 = arith.addf %72, %73 : vector<8x256xf32>
    %75 = arith.truncf %74 : vector<8x256xf32> to vector<8x256xbf16>
    %c0_35 = arith.constant 0 : index
    %c0_36 = arith.constant 0 : index
    %76 = vector.load %arg3[%c0_35, %c0_36] : memref<384x128xbf16, #tpu.memory_space<vmem>>, vector<256x128xbf16>
    %cst_37 = arith.constant dense<0.000000e+00> : vector<8x128xf32>
    %77 = tpu.matmul %75, %76, %cst_37 {dimension_numbers = #tpu.dot_dimension_numbers<[1], [0], [0], [1], [0, 0, 1, 1], [], []>} : vector<8x256xbf16>, vector<256x128xbf16>, vector<8x128xf32> -> vector<8x128xf32>
    %c0_38 = arith.constant 0 : index
    %c1024 = arith.constant 1024 : index
    %78 = vector.load %arg4[%c0_38, %c1024] : memref<1x1280xf32, #tpu.memory_space<vmem>>, vector<1x128xf32>
    %79 = vector.broadcast %78 : vector<1x128xf32> to vector<8x128xf32>
    %80 = arith.addf %77, %79 : vector<8x128xf32>
    %cst_39 = arith.constant 0.000000e+00 : f32
    %81 = vector.broadcast %cst_39 : f32 to vector<8x128xf32>
    %82 = arith.maximumf %80, %81 : vector<8x128xf32>
    %83 = arith.truncf %82 : vector<8x128xf32> to vector<8x128xbf16>
    %c256_40 = arith.constant 256 : index
    %c0_41 = arith.constant 0 : index
    %84 = vector.load %arg3[%c256_40, %c0_41] : memref<384x128xbf16, #tpu.memory_space<vmem>>, vector<128x128xbf16>
    %cst_42 = arith.constant dense<0.000000e+00> : vector<8x128xf32>
    %85 = tpu.matmul %83, %84, %cst_42 {dimension_numbers = #tpu.dot_dimension_numbers<[1], [0], [0], [1], [0, 0, 1, 1], [], []>} : vector<8x128xbf16>, vector<128x128xbf16>, vector<8x128xf32> -> vector<8x128xf32>
    %c0_43 = arith.constant 0 : index
    %c1152 = arith.constant 1152 : index
    %86 = vector.load %arg4[%c0_43, %c1152] : memref<1x1280xf32, #tpu.memory_space<vmem>>, vector<1x128xf32>
    %87 = vector.broadcast %86 : vector<1x128xf32> to vector<8x128xf32>
    %88 = arith.addf %85, %87 : vector<8x128xf32>
    %89 = arith.negf %88 : vector<8x128xf32>
    %90 = math.exp %89 : vector<8x128xf32>
    %cst_44 = arith.constant 1.000000e+00 : f32
    %91 = vector.broadcast %cst_44 : f32 to vector<8x128xf32>
    %92 = arith.addf %91, %90 : vector<8x128xf32>
    %93 = arith.divf %91, %92 : vector<8x128xf32>
    %c0_45 = arith.constant 0 : index
    %c0_46 = arith.constant 0 : index
    %94 = vector.load %arg5[%c0_45, %c0_46] : memref<8x128xf32, #tpu.memory_space<vmem>>, vector<8x128xf32>
    tpu.vector_store %arg5[%c0_45, %c0_46], %93 {strides = array<i32>} : memref<8x128xf32, #tpu.memory_space<vmem>>, vector<8x128xf32>,
    return
  }
}

</mosaic_0001>

<bundles_post_ra>
// kernel: forward.1
= control target key start
LH: loop header
LB: loop body
LE: loop exit
PB: predicated region body
PF: predicated region fallthrough
CT: control target
= control target key end

     0   :  { %s1281_s19 = smov 64   ;;  %vm574_vm14 = vcmask 1040384   ;;  %s1684_s1 = inlined_call_operand.vmem [shape: bf16[2,128,128], index: 1, kind: input, shape index: {}]   ;;  %s1685_s0 = inlined_call_operand.vmem [shape: f32[8,256], index: 0, kind: input, shape index: {}]   ;;  %s1686_s4 = inlined_call_operand.vmem [shape: f32[1,1280], index: 4, kind: input, shape index: {}]   ;;  %s1687_s2 = inlined_call_operand.vmem [shape: bf16[256,256], index: 2, kind: input, shape index: {}]   ;;  %s1688_s3 = inlined_call_operand.vmem [shape: bf16[384,128], index: 3, kind: input, shape index: {}]   ;;  %s1689_s5 = inlined_call_operand.vmem [shape: f32[8,128], index: 5, kind: output, shape index: {}]  }
   0x1   :  { %v1182_v0 = vld [vmem:[%s1684_s1 + $0x38] sm:$0xff]  ;;  %v1181_v1 = vld [vmem:[%s1684_s1 + $0x30] sm:$0xff]  ;;  %v20_v2 = vld [vmem:[%s1685_s0 + $0x8] sm:$0xff] }
   0x2   :  { %93 = vmatpush.bf16.msra.mxu0 %v1182_v0  ;;  %v21_v3 = vpack.c.bf16 %v20_v2, %v20_v2  ;;  %v1180_v4 = vld [vmem:[%s1684_s1 + $0x28] sm:$0xff]  ;;  %v1179_v5 = vld [vmem:[%s1684_s1 + $0x20] sm:$0xff]  ;;  %v1178_v6 = vld [vmem:[%s1684_s1 + $0x18] sm:$0xff] }
   0x3   :  { %v1177_v7 = vld [vmem:[%s1684_s1 + $0x10] sm:$0xff]  ;;  %v1176_v8 = vld [vmem:[%s1684_s1 + $0x8] sm:$0xff]  ;;  %v1175_v9 = vld [vmem:[%s1684_s1] sm:$0xff] }
   0x4   :  { %22 = vst [vmem:[#allocation2 + $0x4] sm:$0xf] %v21_v3  ;;  %v23_v10 = vld [vmem:[%s1685_s0] sm:$0xff]  ;;  %v1190_v13 = vld [vmem:[%s1684_s1 + $0x78] sm:$0xff]  ;;  %v1189_v16 = vld [vmem:[%s1684_s1 + $0x70] sm:$0xff]  ;;  %s1280_s0 = smov 96  }
   0x5   :  { %v24_v11 = vpack.c.bf16 %v23_v10, %v23_v10  ;;  %v1250_v12 = vld [vmem:[%s1686_s4] ss:$0 sm:$0xff]  ;;  %203 = vmatpush.bf16.msra.mxu1 %v1190_v13  ;;  %v1188_v32 = vld [vmem:[%s1684_s1 + $0x68] sm:$0xff]  ;;  %v1186_v34 = vld [vmem:[%s1684_s1 + $0x58] sm:$0xff] }
   0x6   :  { %94 = vmatpush.bf16.msra.mxu0 %v1181_v1  ;;  %v1187_v33 = vld [vmem:[%s1684_s1 + $0x60] sm:$0xff]  ;;  %v1185_v35 = vld [vmem:[%s1684_s1 + $0x50] sm:$0xff]  ;;  %v1184_v36 = vld [vmem:[%s1684_s1 + $0x48] sm:$0xff] }
   0x7   :  { %v1183_v37 = vld [vmem:[%s1684_s1 + $0x40] sm:$0xff]  ;;  %v1008_v62 = vld [vmem:[%s1687_s2 + $0x70] sm:$0xf]  ;;  %v1206_v63 = vld [vmem:[%s1687_s2 + $0x74] sm:$0xf0] }
   0x8   :  { %v1251_v44 = vld [vmem:[%s1686_s4 + $0x1] ss:$0 sm:$0xff]  ;;  %v1072_v0 = vld [vmem:[%s1687_s2 + $0xf0] sm:$0xf]  ;;  %v1009_v1 = vor.u32 %v1206_v63, %v1008_v62  ;;  %v1222_v2 = vld [vmem:[%s1687_s2 + $0xf4] sm:$0xf0] }
   0x9   :  { %204 = vmatpush.bf16.msra.mxu1 %v1189_v16  ;;  %v1205_v3 = vld [vmem:[%s1687_s2 + $0x74] sm:$0xf]  ;;  %v1220_v13 = vld [vmem:[%s1687_s2 + $0xe4] sm:$0xf0]  ;;  %v1203_v16 = vld [vmem:[%s1687_s2 + $0x64] sm:$0xf] }
   0xa   :  { %95 = vmatpush.bf16.msra.mxu0 %v1180_v4  ;;  %v1010_v4 = vld [vmem:[%s1687_s2 + $0x78] sm:$0xf0]  ;;  %451 = vmatpush.bf16.msra.mxu2 %v1009_v1  ;;  %v1212_v63 = vld [vmem:[%s1687_s2 + $0xa4] sm:$0xf0]  ;;  %v970_v1 = vld [vmem:[%s1687_s2 + $0x28] sm:$0xf0] }
   0xd   :  { %205 = vmatpush.bf16.msra.mxu1 %v1188_v32 }
   0xe   :  { %96 = vmatpush.bf16.msra.mxu0 %v1179_v5  ;;  %v1073_v5 = vor.u32 %v1222_v2, %v1072_v0  ;;  %v1195_v0 = vld [vmem:[%s1687_s2 + $0x24] sm:$0xf] }
  0x10   :  { %464 = vmatpush.bf16.msra.mxu3 %v1073_v5  ;;  %v1034_v5 = vld [vmem:[%s1687_s2 + $0xa8] sm:$0xf0] }
  0x11   :  { %206 = vmatpush.bf16.msra.mxu1 %v1187_v33  ;;  %v984_v33 = vld [vmem:[%s1687_s2 + $0x40] sm:$0xf] }
  0x12   :  { %97 = vmatpush.bf16.msra.mxu0 %v1178_v6  ;;  %v1013_v6 = vor.u32 %v1205_v3, %v1010_v4  ;;  %v973_v3 = vor.u32 %v1195_v0, %v970_v1  ;;  %v1211_v4 = vld [vmem:[%s1687_s2 + $0xa4] sm:$0xf] }
  0x15   :  { %207 = vmatpush.bf16.msra.mxu1 %v1186_v34  ;;  %v1200_v34 = vld [vmem:[%s1687_s2 + $0x44] sm:$0xf0] }
  0x16   :  { %98 = vmatpush.bf16.msra.mxu0 %v1177_v7  ;;  %v1221_v7 = vld [vmem:[%s1687_s2 + $0xf4] sm:$0xf] }
  0x19   :  { %208 = vmatpush.bf16.msra.mxu1 %v1185_v35  ;;  %v1048_v35 = vld [vmem:[%s1687_s2 + $0xc0] sm:$0xf] }
  0x1a   :  { %99 = vmatpush.bf16.msra.mxu0 %v1176_v8  ;;  %v1074_v8 = vld [vmem:[%s1687_s2 + $0xf8] sm:$0xf0] }
  0x1b   :  { %v1077_v10 = vor.u32 %v1221_v7, %v1074_v8  ;;  %v1037_v7 = vor.u32 %v1211_v4, %v1034_v5  ;;  %v1194_v8 = vld [vmem:[%s1687_s2 + $0x14] sm:$0xf0] }
  0x1d   :  { %209 = vmatpush.bf16.msra.mxu1 %v1184_v36 }
  0x1e   :  { %100 = vmatpush.bf16.msra.mxu0 %v1175_v9  ;;  %v1000_v9 = vld [vmem:[%s1687_s2 + $0x60] sm:$0xf] }
  0x21   :  { %101 = vmatmul.bf16.vlgmr.msra.gmra.mxu0 %v24_v11  ;;  %210 = vmatpush.bf16.msra.mxu1 %v1183_v37  ;;  %v1204_v11 = vld [vmem:[%s1687_s2 + $0x64] sm:$0xf0] }
  0x22   :  { %477 = vmatpush.bf16.msrb.mxu0 %v1013_v6  ;;  %v1216_v37 = vld [vmem:[%s1687_s2 + $0xc4] sm:$0xf0]  ;;  %v960_v6 = vld [vmem:[%s1687_s2 + $0x10] sm:$0xf] }
  0x25   :  { %490 = vmatpush.bf16.msrb.mxu1 %v1077_v10  ;;  %v1210_v10 = vld [vmem:[%s1687_s2 + $0x94] sm:$0xf0] }
  0x9e   :  { %v102_v14 = vpop.f32.mrf.mxu0 }
  0x9f   :  { %v103_v15 = vadd.f32 %v1250_v12, %v102_v14  ;;  %v1064_v12 = vld [vmem:[%s1687_s2 + $0xe0] sm:$0xf]  ;;  %v1001_v14 = vor.u32 %v1204_v11, %v1000_v9  ;;  %v1024_v9 = vld [vmem:[%s1687_s2 + $0x90] sm:$0xf]  ;;  %v961_v11 = vor.u32 %v1194_v8, %v960_v6  ;;  %v1228_v6 = vld [vmem:[%s1688_s3 + $0x28] sm:$0xff] }
  0xa1   :  { %v900_v17 = vmul.f32 -1.442695, %v103_v15  ;;  %1254 = vtanh.f32 %v103_v15  ;;  %v1065_v15 = vor.u32 %v1220_v13, %v1064_v12  ;;  %452 = vmatpush.bf16.msra.mxu2 %v1001_v14  ;;  %v1025_v12 = vor.u32 %v1210_v10, %v1024_v9  ;;  %v1193_v13 = vld [vmem:[%s1687_s2 + $0x14] sm:$0xf]  ;;  %v962_v14 = vld [vmem:[%s1687_s2 + $0x18] sm:$0xf0] }
  0xa3   :  { %1256 = vpow2.f32 %v900_v17  ;;  %v1002_v17 = vld [vmem:[%s1687_s2 + $0x68] sm:$0xf0]  ;;  %465 = vmatpush.bf16.msra.mxu3 %v1065_v15  ;;  %v1209_v15 = vld [vmem:[%s1687_s2 + $0x94] sm:$0xf] }
  0xa6   :  { %v104_v18 = vpop.f32.mrf.mxu0 }
  0xa7   :  { %v1255_v19 = vpop.eup %1254  ;;  %v1219_v18 = vld [vmem:[%s1687_s2 + $0xe4] sm:$0xf] }
  0xa8   :  { %126 = vrot.lane.b32.xlu0 %v1255_v19, %s1280_s0  ;;  %v1005_v19 = vor.u32 %v1203_v16, %v1002_v17  ;;  %v965_v16 = vor.u32 %v1193_v13, %v962_v14  ;;  %v1026_v17 = vld [vmem:[%s1687_s2 + $0x98] sm:$0xf0] }
  0xa9   :  { %v1257_v20 = vpop.eup %1256 }
  0xaa   :  { %v109_v21 = vadd.f32 1.0, %v1257_v20  ;;  %v1066_v20 = vld [vmem:[%s1687_s2 + $0xe8] sm:$0xf0]  ;;  %478 = vmatpush.bf16.msrb.mxu0 %v1005_v19  ;;  %v1192_v19 = vld [vmem:[%s1687_s2 + $0x4] sm:$0xf0] }
  0xac   :  { %1258 = vrcp.f32 %v109_v21  ;;  %v121_v25 = vand.u32 2147483648, %v109_v21  ;;  %v119_v27 = vand.u32 2147483647, %v109_v21  ;;  %vm115_vm1 = vweird.f32 %v109_v21 }
  0xae   :  { %v122_v29 = vor.u32 1.1754944e-38, %v121_v25  ;;  %vm120_vm3 = vcmp.eq.f32.partialorder %v119_v27, 8.507059e+37  ;;  %v1218_v25 = vld [vmem:[%s1687_s2 + $0xd4] sm:$0xf0] }
  0xb2   :  { %v1259_v22 = vpop.eup %1258 }
  0xb3   :  { %v111_v23 = vmul.f32 %v1259_v22, %v109_v21  ;;  %vm116_vm0 = vweird.f32 %v1259_v22  ;;  %v992_v21 = vld [vmem:[%s1687_s2 + $0x50] sm:$0xf] }
  0xb4   :  { %vm117_vm2 = vmor %vm115_vm1, %vm116_vm0 }
  0xb5   :  { %v112_v24 = vsub.f32 1.0, %v111_v23  ;;  %v1069_v23 = vor.u32 %v1219_v18, %v1066_v20  ;;  %v952_v18 = vld [vmem:[%s1687_s2] sm:$0xf]  ;;  %v1029_v20 = vor.u32 %v1209_v15, %v1026_v17 }
  0xb7   :  { %v113_v26 = vmul.f32 %v1259_v22, %v112_v24  ;;  %v1056_v24 = vld [vmem:[%s1687_s2 + $0xd0] sm:$0xf]  ;;  %491 = vmatpush.bf16.msrb.mxu1 %v1069_v23  ;;  %v1191_v23 = vld [vmem:[%s1687_s2 + $0x4] sm:$0xf] }
  0xb9   :  { %v114_v28 = vadd.f32 %v1259_v22, %v113_v26  ;;  %v1201_v26 = vld [vmem:[%s1687_s2 + $0x54] sm:$0xf] }
  0xbb   :  { %v118_v30 = vsel %vm117_vm2, %v1259_v22, %v114_v28  ;;  %v1202_v22 = vld [vmem:[%s1687_s2 + $0x54] sm:$0xf0]  ;;  %v994_v28 = vld [vmem:[%s1687_s2 + $0x58] sm:$0xf0] }
  0xbc   :  { %v123_v31 = vsel %vm120_vm3, %v122_v29, %v118_v30  ;;  %v993_v27 = vor.u32 %v1202_v22, %v992_v21  ;;  %v1217_v29 = vld [vmem:[%s1687_s2 + $0xd4] sm:$0xf]  ;;  %v1058_v30 = vld [vmem:[%s1687_s2 + $0xd8] sm:$0xf0]  ;;  %v997_v32 = vor.u32 %v1201_v26, %v994_v28  ;;  %v1016_v21 = vld [vmem:[%s1687_s2 + $0x80] sm:$0xf] }
  0xbd   :  { %128 = vrot.lane.b32.xlu0 %v123_v31, %s1281_s19  ;;  %v1061_v36 = vor.u32 %v1217_v29, %v1058_v30  ;;  %v1208_v22 = vld [vmem:[%s1687_s2 + $0x84] sm:$0xf0]  ;;  %v1207_v26 = vld [vmem:[%s1687_s2 + $0x84] sm:$0xf] }
  0xbe   :  { %453 = vmatpush.bf16.msra.mxu2 %v993_v27  ;;  %479 = vmatpush.bf16.msrb.mxu0 %v997_v32  ;;  %v1018_v27 = vld [vmem:[%s1687_s2 + $0x88] sm:$0xf0]  ;;  %v1017_v28 = vor.u32 %v1208_v22, %v1016_v21 }
  0xbf   :  { %492 = vmatpush.bf16.msrb.mxu1 %v1061_v36  ;;  %v1021_v30 = vor.u32 %v1207_v26, %v1018_v27 }
 0x11a   :  { %v127_v38 = vpop.permute.xlu0 %126 }
 0x11b   :  { %v130_v39 = vmul.f32 %v127_v38, %v123_v31  ;;  %v1057_v31 = vor.u32 %v1218_v25, %v1056_v24  ;;  %v1199_v38 = vld [vmem:[%s1687_s2 + $0x44] sm:$0xf]  ;;  %v953_v24 = vor.u32 %v1192_v19, %v952_v18  ;;  %v954_v25 = vld [vmem:[%s1687_s2 + $0x8] sm:$0xf0] }
 0x11c   :  { %v957_v29 = vor.u32 %v1191_v23, %v954_v25  ;;  %v1227_v19 = vld [vmem:[%s1688_s3 + $0x20] sm:$0xff] }
 0x11d   :  { %1260 = vtanh.f32 %v130_v39  ;;  %v986_v39 = vld [vmem:[%s1687_s2 + $0x48] sm:$0xf0]  ;;  %466 = vmatpush.bf16.msra.mxu3 %v1057_v31 }
 0x123   :  { %v1261_v40 = vpop.eup %1260 }
 0x12f   :  { %v129_v41 = vpop.permute.xlu0 %128 }
 0x130   :  { %v132_v42 = vmul.f32 %v1261_v40, %v129_v41  ;;  %v1215_v40 = vld [vmem:[%s1687_s2 + $0xc4] sm:$0xf]  ;;  %v1050_v41 = vld [vmem:[%s1687_s2 + $0xc8] sm:$0xf0] }
 0x132   :  { %v133_v43 = vpack.c.bf16 %v132_v42, %v132_v42  ;;  %v985_v42 = vor.u32 %v1200_v34, %v984_v33 }
 0x134   :  { %211 = vmatmul.bf16.vlgmr.msra.gmra.mxu1 %v133_v43  ;;  %v1049_v43 = vor.u32 %v1216_v37, %v1048_v35  ;;  %454 = vmatpush.bf16.msra.mxu2 %v985_v42  ;;  %v1282_v42 = vmov 8.0  }
 0x136   :  { %467 = vmatpush.bf16.msra.mxu3 %v1049_v43 }
 0x1b1   :  { %v212_v45 = vpop.f32.mrf.mxu1 }
 0x1b2   :  { %v213_v46 = vadd.f32 %v1251_v44, %v212_v45  ;;  %v989_v44 = vor.u32 %v1199_v38, %v986_v39  ;;  %v1053_v45 = vor.u32 %v1215_v40, %v1050_v41 }
 0x1b4   :  { %v949_v47 = vmul.f32 -1.442695, %v213_v46  ;;  %1262 = vtanh.f32 %v213_v46  ;;  %480 = vmatpush.bf16.msrb.mxu0 %v989_v44  ;;  %493 = vmatpush.bf16.msrb.mxu1 %v1053_v45  ;;  %v976_v46 = vld [vmem:[%s1687_s2 + $0x30] sm:$0xf] }
 0x1b6   :  { %1264 = vpow2.f32 %v949_v47  ;;  %v1198_v47 = vld [vmem:[%s1687_s2 + $0x34] sm:$0xf0] }
 0x1b9   :  { %v214_v48 = vpop.f32.mrf.mxu1 }
 0x1ba   :  { %v1263_v49 = vpop.eup %1262  ;;  %v1040_v48 = vld [vmem:[%s1687_s2 + $0xb0] sm:$0xf] }
 0x1bb   :  { %236 = vrot.lane.b32.xlu1 %v1263_v49, %s1280_s0  ;;  %v977_v49 = vor.u32 %v1198_v47, %v976_v46 }
 0x1bc   :  { %v1265_v50 = vpop.eup %1264 }
 0x1bd   :  { %v219_v51 = vadd.f32 1.0, %v1265_v50  ;;  %v1214_v50 = vld [vmem:[%s1687_s2 + $0xb4] sm:$0xf0]  ;;  %455 = vmatpush.bf16.msra.mxu2 %v977_v49 }
 0x1bf   :  { %1266 = vrcp.f32 %v219_v51  ;;  %v231_v55 = vand.u32 2147483648, %v219_v51  ;;  %v229_v57 = vand.u32 2147483647, %v219_v51  ;;  %vm225_vm5 = vweird.f32 %v219_v51 }
 0x1c1   :  { %v232_v59 = vor.u32 1.1754944e-38, %v231_v55  ;;  %vm230_vm7 = vcmp.eq.f32.partialorder %v229_v57, 8.507059e+37  ;;  %v1213_v55 = vld [vmem:[%s1687_s2 + $0xb4] sm:$0xf] }
 0x1c5   :  { %v1267_v52 = vpop.eup %1266 }
 0x1c6   :  { %v221_v53 = vmul.f32 %v1267_v52, %v219_v51  ;;  %vm226_vm4 = vweird.f32 %v1267_v52  ;;  %v1197_v51 = vld [vmem:[%s1687_s2 + $0x34] sm:$0xf] }
 0x1c7   :  { %vm227_vm6 = vmor %vm225_vm5, %vm226_vm4 }
 0x1c8   :  { %v222_v54 = vsub.f32 1.0, %v221_v53  ;;  %v1041_v53 = vor.u32 %v1214_v50, %v1040_v48 }
 0x1ca   :  { %v223_v56 = vmul.f32 %v1267_v52, %v222_v54  ;;  %468 = vmatpush.bf16.msra.mxu3 %v1041_v53  ;;  %v1238_v53 = vld [vmem:[%s1688_s3 + $0x78] sm:$0xff] }
 0x1cc   :  { %v224_v58 = vadd.f32 %v1267_v52, %v223_v56  ;;  %v1042_v56 = vld [vmem:[%s1687_s2 + $0xb8] sm:$0xf0] }
 0x1cd   :  { %v1045_v57 = vor.u32 %v1213_v55, %v1042_v56 }
 0x1ce   :  { %v228_v60 = vsel %vm227_vm6, %v1267_v52, %v224_v58  ;;  %v978_v52 = vld [vmem:[%s1687_s2 + $0x38] sm:$0xf0]  ;;  %v968_v58 = vld [vmem:[%s1687_s2 + $0x20] sm:$0xf] }
 0x1cf   :  { %v1376_v61 = vsel %vm230_vm7, %v232_v59, %v228_v60  ;;  %v981_v54 = vor.u32 %v1197_v51, %v978_v52  ;;  %v1196_v59 = vld [vmem:[%s1687_s2 + $0x24] sm:$0xf0]  ;;  %v1032_v60 = vld [vmem:[%s1687_s2 + $0xa0] sm:$0xf]  ;;  %494 = vmatpush.bf16.msrb.mxu1 %v1045_v57  ;;  %v1230_v52 = vld [vmem:[%s1688_s3 + $0x38] sm:$0xff] }
 0x1d0   :  { %238 = vrot.lane.b32.xlu1 %v1376_v61, %s1281_s19  ;;  %v969_v62 = vor.u32 %v1196_v59, %v968_v58  ;;  %v1033_v2 = vor.u32 %v1212_v63, %v1032_v60  ;;  %v1229_v58 = vld [vmem:[%s1688_s3 + $0x30] sm:$0xff] }
 0x1d1   :  { %481 = vmatpush.bf16.msrb.mxu0 %v981_v54  ;;  %v1237_v59 = vld [vmem:[%s1688_s3 + $0x70] sm:$0xff] }
 0x1d2   :  { %456 = vmatpush.bf16.msra.mxu2 %v969_v62  ;;  %469 = vmatpush.bf16.msra.mxu3 %v1033_v2 }
 0x1d3   :  { %495 = vmatpush.bf16.msrb.mxu1 %v1037_v7  ;;  %v1236_v7 = vld [vmem:[%s1688_s3 + $0x68] sm:$0xff] }
 0x1d5   :  { %482 = vmatpush.bf16.msrb.mxu0 %v973_v3 }
 0x1d6   :  { %457 = vmatpush.bf16.msra.mxu2 %v961_v11  ;;  %470 = vmatpush.bf16.msra.mxu3 %v1025_v12 }
 0x1d7   :  { %496 = vmatpush.bf16.msrb.mxu1 %v1029_v20  ;;  %v1235_v20 = vld [vmem:[%s1688_s3 + $0x60] sm:$0xff] }
 0x1d9   :  { %483 = vmatpush.bf16.msrb.mxu0 %v965_v16 }
 0x1da   :  { %458 = vmatpush.bf16.msra.mxu2 %v953_v24  ;;  %471 = vmatpush.bf16.msra.mxu3 %v1017_v28 }
 0x1db   :  { %497 = vmatpush.bf16.msrb.mxu1 %v1021_v30  ;;  %v1226_v30 = vld [vmem:[%s1688_s3 + $0x18] sm:$0xff] }
 0x1dd   :  { %484 = vmatpush.bf16.msrb.mxu0 %v957_v29 }
 0x1de   :  { %735 = vmatpush.bf16.msrb.mxu2 %v1230_v52  ;;  %748 = vmatpush.bf16.msrb.mxu3 %v1238_v53  ;;  %v1231_v52 = vld [vmem:[%s1688_s3 + $0x40] sm:$0xff] }
 0x1e2   :  { %736 = vmatpush.bf16.msrb.mxu2 %v1229_v58  ;;  %749 = vmatpush.bf16.msrb.mxu3 %v1237_v59  ;;  %v1246_v59 = vld [vmem:[%s1688_s3 + $0xb8] sm:$0xff] }
 0x1e3   :  { %831 = vmatpush.bf16.msra.mxu0 %v1246_v59 }
 0x1e6   :  { %737 = vmatpush.bf16.msrb.mxu2 %v1228_v6  ;;  %750 = vmatpush.bf16.msrb.mxu3 %v1236_v7 }
 0x1ea   :  { %738 = vmatpush.bf16.msrb.mxu2 %v1227_v19  ;;  %751 = vmatpush.bf16.msrb.mxu3 %v1235_v20  ;;  %v1241_v19 = vld [vmem:[%s1688_s3 + $0x90] sm:$0xff] }
 0x1ee   :  { %739 = vmatpush.bf16.msrb.mxu2 %v1226_v30 }
 0x22d   :  { %v237_v31 = vpop.permute.xlu1 %236 }
 0x22e   :  { %v240_v32 = vmul.f32 %v237_v31, %v1376_v61  ;;  %v278_v61 = vld [vmem:[%s1686_s4 + $0x2] sm:$0x3]  ;;  %v1234_v31 = vld [vmem:[%s1688_s3 + $0x58] sm:$0xff] }
 0x22f   :  { %v281_v44 = vperm.slane %v278_v61, 1  ;;  %v280_v49 = vperm.slane %v278_v61, 0  ;;  %752 = vmatpush.bf16.msrb.mxu3 %v1234_v31 }
 0x230   :  { %1268 = vtanh.f32 %v240_v32 }
 0x231   :  { %1270 = vrcp.f32 %v1282_v42 }
 0x236   :  { %v1269_v33 = vpop.eup %1268 }
 0x237   :  { %v1271_v43 = vpop.eup %1270 }
 0x238   :  { %v518_v47 = vmul.f32 8.0, %v1271_v43  ;;  %vm522_vm8 = vweird.f32 %v1271_v43 }
 0x23a   :  { %v519_v51 = vsub.f32 1.0, %v518_v47  ;;  %v1232_v47 = vld [vmem:[%s1688_s3 + $0x48] sm:$0xff] }
 0x23c   :  { %v520_v63 = vmul.f32 %v1271_v43, %v519_v51  ;;  %v1223_v51 = vld [vmem:[%s1688_s3] sm:$0xff] }
 0x23e   :  { %v521_v10 = vadd.f32 %v1271_v43, %v520_v63  ;;  %v1245_v63 = vld [vmem:[%s1688_s3 + $0xb0] sm:$0xff] }
 0x23f   :  { %832 = vmatpush.bf16.msra.mxu0 %v1245_v63 }
 0x240   :  { %v523_v23 = vsel %vm522_vm8, %v1271_v43, %v521_v10 }
 0x242   :  { %v239_v34 = vpop.permute.xlu1 %238 }
 0x243   :  { %v242_v35 = vmul.f32 %v1269_v33, %v239_v34 }
 0x245   :  { %v243_v36 = vpack.c.bf16 %v242_v35, %v242_v35 }
 0x247   :  { %244 = vst [vmem:[#allocation2] sm:$0xf] %v243_v36 }
 0x24e   :  { %v245_v37 = vld [vmem:[#allocation2] sm:$0xff] }
 0x24f   :  { %v285_v38 = vunpack.c.l.b16 %v245_v37  ;;  %v286_v39 = vunpack.c.h.b16 %v245_v37 }
 0x251   :  { %v287_v40 = vpack.c.b16 %v285_v38, %v285_v38  ;;  %v288_v41 = vpack.c.b16 %v286_v39, %v286_v39 }
 0x253   :  { %459 = vmatmul.bf16.vlgmr.msra.gmra.mxu2 %v287_v40  ;;  %472 = vmatmul.bf16.vlgmr.msra.gmra.mxu3 %v288_v41 }
 0x254   :  { %485 = vmatmul.bf16.vlgmr.msrb.gmra.mxu0 %v287_v40  ;;  %498 = vmatmul.bf16.vlgmr.msrb.gmra.mxu1 %v288_v41  ;;  %v1225_v40 = vld [vmem:[%s1688_s3 + $0x10] sm:$0xff] }
 0x255   :  { %v1233_v41 = vld [vmem:[%s1688_s3 + $0x50] sm:$0xff]  ;;  %740 = vmatpush.bf16.msrb.mxu2 %v1225_v40 }
 0x256   :  { %753 = vmatpush.bf16.msrb.mxu3 %v1233_v41 }
 0x25a   :  { %754 = vmatpush.bf16.msrb.mxu3 %v1232_v47 }
 0x25e   :  { %755 = vmatpush.bf16.msrb.mxu3 %v1231_v52 }
 0x2d1   :  { %v486_v45 = vpop.f32.mrf.mxu0  ;;  %v499_v46 = vpop.f32.mrf.mxu1 }
 0x2d2   :  { %v487_v48 = vadd.f32 %v486_v45, %v281_v44 }
 0x2d4   :  { %v500_v50 = vadd.f32 %v499_v46, %v487_v48  ;;  %v1224_v46 = vld [vmem:[%s1688_s3 + $0x8] sm:$0xff] }
 0x2d5   :  { %741 = vmatpush.bf16.msrb.mxu2 %v1224_v46 }
 0x2d6   :  { %v1582_v54 = vmax.f32 %v500_v50, 0.0  ;;  %v460_v55 = vpop.f32.mrf.mxu2  ;;  %v473_v56 = vpop.f32.mrf.mxu3 }
 0x2d7   :  { %v461_v57 = vadd.f32 %v460_v55, %v280_v49 }
 0x2d8   :  { %v511_v60 = vrot.slane %v1582_v54, 4  ;;  %v527_v62 = vmul.f32 %v1582_v54, %v1582_v54 }
 0x2d9   :  { %v474_v0 = vadd.f32 %v473_v56, %v461_v57  ;;  %v488_v1 = vpop.f32.mrf.mxu0  ;;  %v501_v2 = vpop.f32.mrf.mxu1  ;;  %742 = vmatpush.bf16.msrb.mxu2 %v1223_v51 }
 0x2da   :  { %v512_v3 = vadd.f32 %v511_v60, %v1582_v54  ;;  %v534_v4 = vrot.slane %v527_v62, 4 }
 0x2db   :  { %v1594_v5 = vmax.f32 %v474_v0, 0.0 }
 0x2dc   :  { %v513_v8 = vrot.slane %v512_v3, 2  ;;  %v535_v9 = vadd.f32 %v534_v4, %v527_v62  ;;  %v1244_v4 = vld [vmem:[%s1688_s3 + $0xa8] sm:$0xff] }
 0x2dd   :  { %v505_v11 = vrot.slane %v1594_v5, 4  ;;  %v526_v12 = vmul.f32 %v1594_v5, %v1594_v5  ;;  %833 = vmatpush.bf16.msra.mxu0 %v1244_v4 }
 0x2de   :  { %v514_v13 = vadd.f32 %v513_v8, %v512_v3  ;;  %v536_v14 = vrot.slane %v535_v9, 2  ;;  %v462_v15 = vpop.f32.mrf.mxu2  ;;  %v475_v16 = vpop.f32.mrf.mxu3 }
 0x2df   :  { %v506_v17 = vadd.f32 %v505_v11, %v1594_v5  ;;  %v528_v18 = vrot.slane %v526_v12, 4  ;;  %v548_v11 = vld [vmem:[%s1686_s4 + $0x4] sm:$0x3]  ;;  %v1242_v15 = vld [vmem:[%s1688_s3 + $0x98] sm:$0xff] }
 0x2e0   :  { %v515_v21 = vrot.slane %v514_v13, 1  ;;  %v537_v22 = vadd.f32 %v536_v14, %v535_v9  ;;  %v1243_v9 = vld [vmem:[%s1688_s3 + $0xa0] sm:$0xff] }
 0x2e1   :  { %v507_v24 = vrot.slane %v506_v17, 2  ;;  %v529_v25 = vadd.f32 %v528_v18, %v526_v12  ;;  %834 = vmatpush.bf16.msra.mxu0 %v1243_v9 }
 0x2e2   :  { %v516_v26 = vadd.f32 %v515_v21, %v514_v13  ;;  %v538_v27 = vrot.slane %v537_v22, 1  ;;  %v578_v21 = vld [vmem:[%s1686_s4 + $0x6] sm:$0x3] }
 0x2e3   :  { %v508_v28 = vadd.f32 %v507_v24, %v506_v17  ;;  %v530_v29 = vrot.slane %v529_v25, 2 }
 0x2e4   :  { %v1618_v32 = vmul.f32 %v523_v23, %v516_v26  ;;  %v539_v33 = vadd.f32 %v538_v27, %v537_v22 }
 0x2e5   :  { %v509_v34 = vrot.slane %v508_v28, 1  ;;  %v531_v35 = vadd.f32 %v530_v29, %v529_v25  ;;  %835 = vmatpush.bf16.msra.mxu0 %v1242_v15 }
 0x2e6   :  { %v541_v36 = vmul.f32 %v539_v33, %v523_v23  ;;  %v543_v37 = vmul.f32 %v1618_v32, %v1618_v32 }
 0x2e7   :  { %v510_v38 = vadd.f32 %v509_v34, %v508_v28  ;;  %v532_v39 = vrot.slane %v531_v35, 1  ;;  %v1240_v34 = vld [vmem:[%s1688_s3 + $0x88] sm:$0xff] }
 0x2e8   :  { %v545_v42 = vsub.f32 %v541_v36, %v543_v37 }
 0x2e9   :  { %v533_v61 = vadd.f32 %v532_v39, %v531_v35  ;;  %v524_v43 = vmul.f32 %v523_v23, %v510_v38  ;;  %836 = vmatpush.bf16.msra.mxu0 %v1241_v19  ;;  %v1239_v35 = vld [vmem:[%s1688_s3 + $0x80] sm:$0xff] }
 0x2ea   :  { %v547_v44 = vmax.f32 %v545_v42, 0.0 }
 0x2eb   :  { %v540_v45 = vmul.f32 %v533_v61, %v523_v23  ;;  %v542_v48 = vmul.f32 %v524_v43, %v524_v43  ;;  %v1253_v61 = vld [vmem:[%s1686_s4 + $0x9] ss:$0 sm:$0xff] }
 0x2ec   :  { %v550_v49 = vadd.f32 1e-05, %v547_v44 }
 0x2ed   :  { %v544_v50 = vsub.f32 %v540_v45, %v542_v48  ;;  %837 = vmatpush.bf16.msra.mxu0 %v1240_v34 }
 0x2ee   :  { %1272 = vrsqrt.f32 %v550_v49  ;;  %vm567_vm10 = vweird.f32 %v550_v49 }
 0x2ef   :  { %v546_v53 = vmax.f32 %v544_v50, 0.0 }
 0x2f1   :  { %v549_v55 = vadd.f32 1e-05, %v546_v53  ;;  %838 = vmatpush.bf16.msra.mxu0 %v1239_v35 }
 0x2f3   :  { %1274 = vrsqrt.f32 %v549_v55  ;;  %vm557_vm13 = vweird.f32 %v549_v55 }
 0x2f4   :  { %v1273_v56 = vpop.eup %1272 }
 0x2f5   :  { %v562_v57 = vmul.f32 %v1273_v56, %v550_v49  ;;  %vm568_vm9 = vweird.f32 %v1273_v56 }
 0x2f6   :  { %vm569_vm11 = vmor %vm567_vm10, %vm568_vm9 }
 0x2f7   :  { %v563_v58 = vmul.f32 %v1273_v56, %v562_v57 }
 0x2f9   :  { %v1275_v60 = vpop.eup %1274  ;;  %v564_v62 = vmul.f32 0.5, %v563_v58 }
 0x2fa   :  { %v552_v0 = vmul.f32 %v1275_v60, %v549_v55  ;;  %vm558_vm12 = vweird.f32 %v1275_v60 }
 0x2fb   :  { %v565_v1 = vsub.f32 1.5, %v564_v62  ;;  %vm559_vm15 = vmor %vm557_vm13, %vm558_vm12 }
 0x2fc   :  { %v553_v2 = vmul.f32 %v1275_v60, %v552_v0 }
 0x2fd   :  { %v566_v3 = vmul.f32 %v1273_v56, %v565_v1 }
 0x2fe   :  { %v554_v6 = vmul.f32 0.5, %v553_v2 }
 0x2ff   :  { %v570_v8 = vsel %vm569_vm11, %v1273_v56, %v566_v3 }
 0x300   :  { %v555_v7 = vsub.f32 1.5, %v554_v6  ;;  %v573_v12 = vrot.slane %v570_v8, 7 }
 0x302   :  { %v556_v10 = vmul.f32 %v1275_v60, %v555_v7 }
 0x304   :  { %v560_v13 = vsel %vm559_vm15, %v1275_v60, %v556_v10 }
 0x305   :  { %v575_v14 = vsel %vm574_vm14, %v560_v13, %v573_v12 }
 0x306   :  { %v577_v16 = vmul.f32 %v575_v14, %v548_v11 }
 0x308   :  { %v580_v17 = vperm.slane %v577_v16, 0  ;;  %v581_v18 = vperm.slane %v577_v16, 1 }
 0x30a   :  { %v585_v20 = vmul.f32 %v581_v18, %v1618_v32  ;;  %v584_v22 = vmul.f32 %v580_v17, %v524_v43  ;;  %v592_v26 = vmul.f32 %v580_v17, %v1594_v5  ;;  %v593_v28 = vmul.f32 %v581_v18, %v1582_v54  ;;  %v1252_v54 = vld [vmem:[%s1686_s4 + $0x8] ss:$0 sm:$0xff] }
 0x30c   :  { %v588_v23 = vrot.slane %v585_v20, 7 }
 0x30e   :  { %v589_v24 = vsel %vm574_vm14, %v584_v22, %v588_v23 }
 0x30f   :  { %v591_v25 = vsub.f32 %v578_v21, %v589_v24 }
 0x311   :  { %v595_v27 = vperm.slane %v591_v25, 0  ;;  %v596_v29 = vperm.slane %v591_v25, 1 }
 0x313   :  { %v599_v30 = vadd.f32 %v595_v27, %v592_v26  ;;  %v600_v31 = vadd.f32 %v596_v29, %v593_v28 }
 0x315   :  { %v601_v33 = vpack.c.bf16 %v599_v30, %v599_v30  ;;  %v602_v32 = vpack.c.bf16 %v600_v31, %v600_v31 }
 0x317   :  { %743 = vmatmul.bf16.vlgmr.msrb.gmra.mxu2 %v601_v33  ;;  %756 = vmatmul.bf16.vlgmr.msrb.gmra.mxu3 %v602_v32 }
 0x39a   :  { %v744_v5 = vpop.f32.mrf.mxu2  ;;  %v757_v36 = vpop.f32.mrf.mxu3 }
 0x39b   :  { %v745_v37 = vadd.f32 %v1252_v54, %v744_v5 }
 0x39d   :  { %v758_v38 = vadd.f32 %v757_v36, %v745_v37 }
 0x39f   :  { %v761_v39 = vmax.f32 %v758_v38, 0.0 }
 0x3a1   :  { %v762_v40 = vpack.c.bf16 %v761_v39, %v761_v39 }
 0x3a2   :  { %v746_v41 = vpop.f32.mrf.mxu2  ;;  %v759_v42 = vpop.f32.mrf.mxu3 }
 0x3a3   :  { %839 = vmatmul.bf16.vlgmr.msra.gmra.mxu0 %v762_v40 }
 0x420   :  { %v840_v43 = vpop.f32.mrf.mxu0 }
 0x421   :  { %v841_v44 = vadd.f32 %v1253_v61, %v840_v43 }
 0x423   :  { %v1174_v45 = vmul.f32 -1.442695, %v841_v44 }
 0x425   :  { %1276 = vpow2.f32 %v1174_v45 }
 0x428   :  { %v842_v46 = vpop.f32.mrf.mxu0 }
 0x42b   :  { %v1277_v47 = vpop.eup %1276 }
 0x42c   :  { %v847_v48 = vadd.f32 1.0, %v1277_v47 }
 0x42e   :  { %1278 = vrcp.f32 %v847_v48  ;;  %v859_v52 = vand.u32 2147483648, %v847_v48  ;;  %v857_v55 = vand.u32 2147483647, %v847_v48  ;;  %vm853_vm1 = vweird.f32 %v847_v48 }
 0x430   :  { %v860_v57 = vor.u32 1.1754944e-38, %v859_v52  ;;  %vm858_vm3 = vcmp.eq.f32.partialorder %v857_v55, 8.507059e+37 }
 0x434   :  { %v1279_v49 = vpop.eup %1278 }
 0x435   :  { %v849_v50 = vmul.f32 %v1279_v49, %v847_v48  ;;  %vm854_vm0 = vweird.f32 %v1279_v49 }
 0x436   :  { %vm855_vm2 = vmor %vm853_vm1, %vm854_vm0 }
 0x437   :  { %v850_v51 = vsub.f32 1.0, %v849_v50 }
 0x439   :  { %v851_v53 = vmul.f32 %v1279_v49, %v850_v51 }
 0x43b   :  { %v852_v56 = vadd.f32 %v1279_v49, %v851_v53 }
 0x43d   :  { %v856_v58 = vsel %vm855_vm2, %v1279_v49, %v852_v56 }
 0x43e   :  { %v861_v59 = vsel %vm858_vm3, %v860_v57, %v856_v58 }
 0x43f   :  { %863 = vst [vmem:[%s1689_s5] sm:$0xff] %v861_v59 }

</bundles_post_ra>
